<compile_context>
chip_gen: v6e
topology: v6e:2x2x1
jax: 0.10.0
libtpu: 0.0.40
codegen_flags: <defaults>
</compile_context>

<pallas_src>
import functools

import jax
import jax.numpy as jnp
from jax.experimental import pallas as pl
from jax.experimental.pallas import tpu as pltpu

# ---- problem sizes (small, consistent with the module) ----
B = 2                  # batch
C, H, W = 4, 16, 16
D_IN = C * H * W       # 1024 flattened image features
LATENT = 32            # metric_fn.latent_dim
HID = 20               # head hidden width (nn.Linear(..., 20))
ACT_DIM = 8            # act_dim

# ---- packed head-parameter slab layout (f32, lane-dense 128 columns) ----
SLAB_COLS = 128
ROW_W1A = 0                        # (LATENT, HID) -> w1[:L] + w1[L:]
ROW_W1B = ROW_W1A + LATENT         # 32   (LATENT, HID) -> w1[L:]
ROW_W2 = ROW_W1B + LATENT          # 64   (HID, HID) zero-padded to (128, 128)
ROW_W3 = ROW_W2 + SLAB_COLS        # 192  (HID, ACT_DIM) zero-padded to (128, 128)
ROW_BIAS = ROW_W3 + SLAB_COLS      # 320  rows: b1, b2, b3 (each 128-padded)
SLAB_ROWS = ROW_BIAS + 8           # 328  (multiple of 8)


def _round_up(x, m):
    return (x + m - 1) // m * m


def advantage_kernel(img_ref, goal_ref, we_ref, head_ref, out_ref):
    # Activations -> bf16 on the VPU (format cast only; no bf16 VALU arithmetic
    # needed, so v5e is fine). Embed weight is already bf16.
    x_img = img_ref[...].astype(jnp.bfloat16)
    x_goal = goal_ref[...].astype(jnp.bfloat16)
    we = we_ref[...]

    # Shared embed, two MXU dots against the same resident weight ref.
    z = jnp.dot(x_img, we, preferred_element_type=jnp.float32)        # (tm, LATENT)
    z_goal = jnp.dot(x_goal, we, preferred_element_type=jnp.float32)  # (tm, LATENT)

    bias = head_ref[ROW_BIAS:ROW_BIAS + 8, :]            # one aligned (8,128) load
    b1 = bias[0:1, :]
    b2 = bias[1:2, :]
    b3 = bias[2:3, :]

    # Head layer 1 without the lane-axis concat:
    #   cat([z, z - zg], -1) @ w1 + b1 == z @ (w1[:L]+w1[L:]) - zg @ w1[L:] + b1
    h = (jnp.dot(z, head_ref[ROW_W1A:ROW_W1A + LATENT, :],
                 preferred_element_type=jnp.float32)
         - jnp.dot(z_goal, head_ref[ROW_W1B:ROW_W1B + LATENT, :],
                   preferred_element_type=jnp.float32)
         + b1)
    h = jnp.maximum(h, 0.0)                              # ReLU (f32, VPU)

    h = jnp.dot(h, head_ref[ROW_W2:ROW_W2 + SLAB_COLS, :],
                preferred_element_type=jnp.float32) + b2
    h = jnp.maximum(h, 0.0)

    # Zero-padded w3/b3 make the output block lane-dense (tm, 128); real logits
    # live in lanes 0:ACT_DIM, the rest are exact zeros.
    out_ref[...] = (jnp.dot(h, head_ref[ROW_W3:ROW_W3 + SLAB_COLS, :],
                            preferred_element_type=jnp.float32) + b3)


@functools.partial(jax.jit, static_argnames=("tile_m_max",))
def advantage_forward(img, goal, we_bf, head_slab, *, tile_m_max=512):
    """img, goal: (B, C, H, W) NCHW. Returns logits (B, ACT_DIM) f32."""
    b = img.shape[0]
    x_img = img.reshape(b, -1)
    x_goal = goal.reshape(b, -1)

    tile_m = _round_up(min(tile_m_max, _round_up(b, 8)), 8)
    bp = _round_up(b, tile_m)
    if bp != b:
        pad = ((0, bp - b), (0, 0))
        x_img = jnp.pad(x_img, pad)
        x_goal = jnp.pad(x_goal, pad)
    grid = (bp // tile_m,)

    act_bytes = 4 if x_img.dtype == jnp.float32 else 2
    flops = 2 * bp * (2 * D_IN * LATENT + 2 * LATENT * HID
                      + HID * HID + HID * ACT_DIM)
    bytes_accessed = (2 * bp * D_IN * act_bytes            # img + goal reads
                      + we_bf.size * 2                      # bf16 embed weight
                      + head_slab.size * 4                  # packed head slab
                      + bp * SLAB_COLS * 4)                 # lane-dense output

    out_padded = pl.pallas_call(
        advantage_kernel,
        out_shape=jax.ShapeDtypeStruct((bp, SLAB_COLS), jnp.float32),
        grid=grid,
        in_specs=[
            pl.BlockSpec((tile_m, D_IN), lambda i: (i, 0)),          # img rows
            pl.BlockSpec((tile_m, D_IN), lambda i: (i, 0)),          # goal rows
            pl.BlockSpec((D_IN, LATENT), lambda i: (0, 0)),          # embed w (resident)
            pl.BlockSpec((SLAB_ROWS, SLAB_COLS), lambda i: (0, 0)),  # head slab (resident)
        ],
        out_specs=pl.BlockSpec((tile_m, SLAB_COLS), lambda i: (i, 0)),
        compiler_params=pltpu.CompilerParams(
            dimension_semantics=("parallel",)),                      # 2nd TC on v7x
        cost_estimate=pl.CostEstimate(flops=flops, transcendentals=0,
                                      bytes_accessed=bytes_accessed),
    )(x_img, x_goal, we_bf, head_slab)

    return out_padded[:b, :ACT_DIM]


def init_params(key):
    """Raw module-style parameters (what the PyTorch module would hold)."""
    ks = jax.random.split(key, 7)
    scale = 0.05
    we = scale * jax.random.normal(ks[0], (D_IN, LATENT), jnp.float32)
    w1 = scale * jax.random.normal(ks[1], (2 * LATENT, HID), jnp.float32)
    b1 = scale * jax.random.normal(ks[2], (HID,), jnp.float32)
    w2 = scale * jax.random.normal(ks[3], (HID, HID), jnp.float32)
    b2 = scale * jax.random.normal(ks[4], (HID,), jnp.float32)
    w3 = scale * jax.random.normal(ks[5], (HID, ACT_DIM), jnp.float32)
    b3 = scale * jax.random.normal(ks[6], (ACT_DIM,), jnp.float32)
    return we, w1, b1, w2, b2, w3, b3


def prepare_params(params):
    """One-time (init-time) packing: bf16 embed weight + packed f32 head slab.

    NOTE (training): the w1a fold bakes in the concat identity for the forward
    only; a custom VJP must route grads through the un-folded w1 halves and
    must NOT send grad to z_goal via w1[:L] (the module detaches z - z_goal).
    """
    we, w1, b1, w2, b2, w3, b3 = params
    we_bf = we.astype(jnp.bfloat16)

    slab = jnp.zeros((SLAB_ROWS, SLAB_COLS), jnp.float32)
    w1a = w1[:LATENT] + w1[LATENT:]
    w1b = w1[LATENT:]
    slab = slab.at[ROW_W1A:ROW_W1A + LATENT, :HID].set(w1a)
    slab = slab.at[ROW_W1B:ROW_W1B + LATENT, :HID].set(w1b)
    slab = slab.at[ROW_W2:ROW_W2 + HID, :HID].set(w2)
    slab = slab.at[ROW_W3:ROW_W3 + HID, :ACT_DIM].set(w3)
    slab = slab.at[ROW_BIAS, :HID].set(b1.reshape(-1))
    slab = slab.at[ROW_BIAS + 1, :HID].set(b2.reshape(-1))
    slab = slab.at[ROW_BIAS + 2, :ACT_DIM].set(b3.reshape(-1))
    return we_bf, slab


def reference_forward(img, goal, params):
    """Pure-JAX reference using the original concat formulation.

    Embed operands are rounded through bf16 (same quantization the kernel sees);
    matmuls use HIGHEST precision so the comparison isolates the kernel's
    algebraic transforms rather than XLA's default matmul precision.
    """
    we, w1, b1, w2, b2, w3, b3 = params
    b = img.shape[0]
    dot = functools.partial(jnp.dot, precision=jax.lax.Precision.HIGHEST)

    imf = img.reshape(b, -1).astype(jnp.bfloat16).astype(jnp.float32)
    gof = goal.reshape(b, -1).astype(jnp.bfloat16).astype(jnp.float32)
    we_f = we.astype(jnp.bfloat16).astype(jnp.float32)

    z = dot(imf, we_f)
    zg = dot(gof, we_f)
    feat = jnp.concatenate([z, z - zg], axis=-1)      # .detach(): forward no-op
    h = jnp.maximum(dot(feat, w1) + b1, 0.0)
    h = jnp.maximum(dot(h, w2) + b2, 0.0)
    return dot(h, w3) + b3


if __name__ == "__main__":
    key = jax.random.PRNGKey(0)
    k_img, k_goal, k_par = jax.random.split(key, 3)
    img = jax.random.normal(k_img, (B, C, H, W), jnp.float32)
    goal = jax.random.normal(k_goal, (B, C, H, W), jnp.float32)

    params = init_params(k_par)
    we_bf, head_slab = prepare_params(params)   # hoisted out of the per-call path

    logits = advantage_forward(img, goal, we_bf, head_slab)
    jax.block_until_ready(logits)

    ref = reference_forward(img, goal, params)
    assert logits.shape == (B, ACT_DIM)
    # bf16 operands on the MXU -> loose tolerance.
    assert jnp.allclose(logits, ref, atol=1e-2, rtol=1e-2), (
        jnp.max(jnp.abs(logits - ref)))

    # Exercise the grid path (multiple row tiles) with a still-small batch.
    kb_img, kb_goal = jax.random.split(jax.random.PRNGKey(1))
    img_b = jax.random.normal(kb_img, (34, C, H, W), jnp.float32)
    goal_b = jax.random.normal(kb_goal, (34, C, H, W), jnp.float32)
    logits_b = advantage_forward(img_b, goal_b, we_bf, head_slab, tile_m_max=16)
    jax.block_until_ready(logits_b)
    ref_b = reference_forward(img_b, goal_b, params)
    assert logits_b.shape == (34, ACT_DIM)
    assert jnp.allclose(logits_b, ref_b, atol=1e-2, rtol=1e-2), (
        jnp.max(jnp.abs(logits_b - ref_b)))

    print("KERNEL_OK")
</pallas_src>

<mosaic_0001>
module attributes {stable_mosaic.version = 11 : i64} {
  func.func @advantage_kernel(%arg0: i32, %arg1: memref<8x1024xf32, #tpu.memory_space<vmem>>, %arg2: memref<8x1024xf32, #tpu.memory_space<vmem>>, %arg3: memref<1024x32xbf16, #tpu.memory_space<vmem>>, %arg4: memref<328x128xf32, #tpu.memory_space<vmem>>, %arg5: memref<8x128xf32, #tpu.memory_space<vmem>>) attributes {dimension_semantics = [#tpu.dimension_semantics<parallel>], iteration_bounds = array<i64: 1>, scalar_prefetch = 0 : i64, scratch_operands = 0 : i64, tpu.core_type = #tpu.core_type<tc>, window_params = [{transform_indices = @transform_0, window_bounds = array<i64: 8, 1024>}, {transform_indices = @transform_1, window_bounds = array<i64: 8, 1024>}, {pipeline_mode = #tpu.pipeline_mode<synchronous>, transform_indices = @transform_2, window_bounds = array<i64: 1024, 32>}, {pipeline_mode = #tpu.pipeline_mode<synchronous>, transform_indices = @transform_3, window_bounds = array<i64: 328, 128>}, {transform_indices = @transform_4, window_bounds = array<i64: 8, 128>}]} {
    %c0 = arith.constant 0 : index
    %c0_0 = arith.constant 0 : index
    %0 = vector.load %arg1[%c0, %c0_0] : memref<8x1024xf32, #tpu.memory_space<vmem>>, vector<8x1024xf32>
    %1 = arith.truncf %0 : vector<8x1024xf32> to vector<8x1024xbf16>
    %c0_1 = arith.constant 0 : index
    %c0_2 = arith.constant 0 : index
    %2 = vector.load %arg2[%c0_1, %c0_2] : memref<8x1024xf32, #tpu.memory_space<vmem>>, vector<8x1024xf32>
    %3 = arith.truncf %2 : vector<8x1024xf32> to vector<8x1024xbf16>
    %c0_3 = arith.constant 0 : index
    %c0_4 = arith.constant 0 : index
    %4 = vector.load %arg3[%c0_3, %c0_4] : memref<1024x32xbf16, #tpu.memory_space<vmem>>, vector<1024x32xbf16>
    %cst = arith.constant dense<0.000000e+00> : vector<8x32xf32>
    %5 = tpu.matmul %1, %4, %cst {dimension_numbers = #tpu.dot_dimension_numbers<[1], [0], [0], [1], [0, 0, 1, 1], [], []>} : vector<8x1024xbf16>, vector<1024x32xbf16>, vector<8x32xf32> -> vector<8x32xf32>
    %cst_5 = arith.constant dense<0.000000e+00> : vector<8x32xf32>
    %6 = tpu.matmul %3, %4, %cst_5 {dimension_numbers = #tpu.dot_dimension_numbers<[1], [0], [0], [1], [0, 0, 1, 1], [], []>} : vector<8x1024xbf16>, vector<1024x32xbf16>, vector<8x32xf32> -> vector<8x32xf32>
    %c320 = arith.constant 320 : index
    %c0_6 = arith.constant 0 : index
    %7 = vector.load %arg4[%c320, %c0_6] : memref<328x128xf32, #tpu.memory_space<vmem>>, vector<8x128xf32>
    %8 = vector.extract_strided_slice %7 {offsets = [0, 0], sizes = [1, 128], strides = [1, 1]} : vector<8x128xf32> to vector<1x128xf32>
    %9 = vector.extract_strided_slice %7 {offsets = [1, 0], sizes = [1, 128], strides = [1, 1]} : vector<8x128xf32> to vector<1x128xf32>
    %10 = vector.extract_strided_slice %7 {offsets = [2, 0], sizes = [1, 128], strides = [1, 1]} : vector<8x128xf32> to vector<1x128xf32>
    %c0_7 = arith.constant 0 : index
    %c0_8 = arith.constant 0 : index
    %11 = vector.load %arg4[%c0_7, %c0_8] : memref<328x128xf32, #tpu.memory_space<vmem>>, vector<32x128xf32>
    %cst_9 = arith.constant dense<0.000000e+00> : vector<8x128xf32>
    %12 = tpu.matmul %5, %11, %cst_9 {dimension_numbers = #tpu.dot_dimension_numbers<[1], [0], [0], [1], [0, 0, 1, 1], [], []>} : vector<8x32xf32>, vector<32x128xf32>, vector<8x128xf32> -> vector<8x128xf32>
    %c32 = arith.constant 32 : index
    %c0_10 = arith.constant 0 : index
    %13 = vector.load %arg4[%c32, %c0_10] : memref<328x128xf32, #tpu.memory_space<vmem>>, vector<32x128xf32>
    %cst_11 = arith.constant dense<0.000000e+00> : vector<8x128xf32>
    %14 = tpu.matmul %6, %13, %cst_11 {dimension_numbers = #tpu.dot_dimension_numbers<[1], [0], [0], [1], [0, 0, 1, 1], [], []>} : vector<8x32xf32>, vector<32x128xf32>, vector<8x128xf32> -> vector<8x128xf32>
    %15 = arith.subf %12, %14 : vector<8x128xf32>
    %16 = vector.broadcast %8 : vector<1x128xf32> to vector<8x128xf32>
    %17 = arith.addf %15, %16 : vector<8x128xf32>
    %cst_12 = arith.constant 0.000000e+00 : f32
    %18 = vector.broadcast %cst_12 : f32 to vector<8x128xf32>
    %19 = arith.maximumf %17, %18 : vector<8x128xf32>
    %c64 = arith.constant 64 : index
    %c0_13 = arith.constant 0 : index
    %20 = vector.load %arg4[%c64, %c0_13] : memref<328x128xf32, #tpu.memory_space<vmem>>, vector<128x128xf32>
    %cst_14 = arith.constant dense<0.000000e+00> : vector<8x128xf32>
    %21 = tpu.matmul %19, %20, %cst_14 {dimension_numbers = #tpu.dot_dimension_numbers<[1], [0], [0], [1], [0, 0, 1, 1], [], []>} : vector<8x128xf32>, vector<128x128xf32>, vector<8x128xf32> -> vector<8x128xf32>
    %22 = vector.broadcast %9 : vector<1x128xf32> to vector<8x128xf32>
    %23 = arith.addf %21, %22 : vector<8x128xf32>
    %cst_15 = arith.constant 0.000000e+00 : f32
    %24 = vector.broadcast %cst_15 : f32 to vector<8x128xf32>
    %25 = arith.maximumf %23, %24 : vector<8x128xf32>
    %c192 = arith.constant 192 : index
    %c0_16 = arith.constant 0 : index
    %26 = vector.load %arg4[%c192, %c0_16] : memref<328x128xf32, #tpu.memory_space<vmem>>, vector<128x128xf32>
    %cst_17 = arith.constant dense<0.000000e+00> : vector<8x128xf32>
    %27 = tpu.matmul %25, %26, %cst_17 {dimension_numbers = #tpu.dot_dimension_numbers<[1], [0], [0], [1], [0, 0, 1, 1], [], []>} : vector<8x128xf32>, vector<128x128xf32>, vector<8x128xf32> -> vector<8x128xf32>
    %28 = vector.broadcast %10 : vector<1x128xf32> to vector<8x128xf32>
    %29 = arith.addf %27, %28 : vector<8x128xf32>
    %c0_18 = arith.constant 0 : index
    %c0_19 = arith.constant 0 : index
    %30 = vector.load %arg5[%c0_18, %c0_19] : memref<8x128xf32, #tpu.memory_space<vmem>>, vector<8x128xf32>
    tpu.vector_store %arg5[%c0_18, %c0_19], %29 {strides = array<i32>} : memref<8x128xf32, #tpu.memory_space<vmem>>, vector<8x128xf32>,
    return
  }
  func.func @transform_0(%arg0: i32) -> (i32, i32) {
    %c0_i32 = arith.constant 0 : i32
    %c0_i32_0 = arith.constant 0 : i32
    return %arg0, %c0_i32 : i32, i32
  }
  func.func @transform_1(%arg0: i32) -> (i32, i32) {
    %c0_i32 = arith.constant 0 : i32
    %c0_i32_0 = arith.constant 0 : i32
    return %arg0, %c0_i32 : i32, i32
  }
  func.func @transform_2(%arg0: i32) -> (i32, i32) {
    %c0_i32 = arith.constant 0 : i32
    %c0_i32_0 = arith.constant 0 : i32
    %c0_i32_1 = arith.constant 0 : i32
    return %c0_i32, %c0_i32_0 : i32, i32
  }
  func.func @transform_3(%arg0: i32) -> (i32, i32) {
    %c0_i32 = arith.constant 0 : i32
    %c0_i32_0 = arith.constant 0 : i32
    %c0_i32_1 = arith.constant 0 : i32
    return %c0_i32, %c0_i32_0 : i32, i32
  }
  func.func @transform_4(%arg0: i32) -> (i32, i32) {
    %c0_i32 = arith.constant 0 : i32
    %c0_i32_0 = arith.constant 0 : i32
    return %arg0, %c0_i32 : i32, i32
  }
}

</mosaic_0001>

<bundles_post_ra>
// kernel: advantage_forward.1
= control target key start
LH: loop header
LB: loop body
LE: loop exit
PB: predicated region body
PF: predicated region fallthrough
CT: control target
= control target key end

     0   :  { %vm1676_vm0 = vmmov 0   ;;  %vm887_vm1 = vcmask 261120   ;;  %s2374_s2 = inlined_call_operand.vmem [shape: bf16[1024,32], index: 2, kind: input, shape index: {}]   ;;  %s2375_s0 = inlined_call_operand.vmem [shape: f32[8,1024], index: 0, kind: input, shape index: {}]   ;;  %s2376_s1 = inlined_call_operand.vmem [shape: f32[8,1024], index: 1, kind: input, shape index: {}]   ;;  %s2377_s3 = inlined_call_operand.vmem [shape: f32[328,128], index: 3, kind: input, shape index: {}]   ;;  %s2378_s4 = inlined_call_operand.vmem [shape: f32[8,128], index: 4, kind: output, shape index: {}]  }
   0x1   :  { %v1705_v0 = vld [vmem:[%s2374_s2 + $0x78] sm:$0xff]   ;;  %v1728_v4 = vld [vmem:[%s2374_s2 + $0x70] sm:$0xff]   ;;  %v1752_v8 = vld [vmem:[%s2374_s2 + $0x68] sm:$0xff]  }
   0x2   :  { %v1710_v1 = vld [vmem:[%s2374_s2 + $0xf8] sm:$0xff]   ;;  %1297 = vmatprep.subr.bf16.mxu0 %v1705_v0  ;;  %v1734_v5 = vld [vmem:[%s2374_s2 + $0xf0] sm:$0xff]   ;;  %v1758_v9 = vld [vmem:[%s2374_s2 + $0xe8] sm:$0xff]  }
   0x3   :  { %v1716_v2 = vld [vmem:[%s2374_s2 + $0x38] sm:$0xff]   ;;  %1319 = vmatprep.subr.bf16.mxu1 %v1710_v1  ;;  %v1740_v6 = vld [vmem:[%s2374_s2 + $0x30] sm:$0xff]   ;;  %v1764_v10 = vld [vmem:[%s2374_s2 + $0x28] sm:$0xff]  }
   0x4   :  { %v1722_v3 = vld [vmem:[%s2374_s2 + $0xb8] sm:$0xff]   ;;  %1298 = vmatpush3.bf16.msra.mxu0 %v1716_v2  ;;  %v1746_v7 = vld [vmem:[%s2374_s2 + $0xb0] sm:$0xff]   ;;  %v1770_v11 = vld [vmem:[%s2374_s2 + $0xa8] sm:$0xff]  }
   0x5   :  { %1320 = vmatpush3.bf16.msra.mxu1 %v1722_v3  ;;  %1299 = vmatprep.subr.bf16.mxu0 %v1728_v4  ;;  %v1776_v12 = vld [vmem:[%s2374_s2 + $0x60] sm:$0xff]   ;;  %v1800_v16 = vld [vmem:[%s2374_s2 + $0x58] sm:$0xff]   ;;  %v1824_v20 = vld [vmem:[%s2374_s2 + $0x50] sm:$0xff]  }
   0x6   :  { %1321 = vmatprep.subr.bf16.mxu1 %v1734_v5  ;;  %v1782_v13 = vld [vmem:[%s2374_s2 + $0xe0] sm:$0xff]   ;;  %v1806_v17 = vld [vmem:[%s2374_s2 + $0xd8] sm:$0xff]   ;;  %v1830_v21 = vld [vmem:[%s2374_s2 + $0xd0] sm:$0xff]  }
   0x7   :  { %v1788_v14 = vld [vmem:[%s2374_s2 + $0x20] sm:$0xff]   ;;  %v1812_v18 = vld [vmem:[%s2374_s2 + $0x18] sm:$0xff]   ;;  %v1836_v22 = vld [vmem:[%s2374_s2 + $0x10] sm:$0xff]  }
   0x8   :  { %1300 = vmatpush3.bf16.msra.mxu0 %v1740_v6  ;;  %v1794_v15 = vld [vmem:[%s2374_s2 + $0xa0] sm:$0xff]   ;;  %v1818_v19 = vld [vmem:[%s2374_s2 + $0x98] sm:$0xff]   ;;  %v1842_v23 = vld [vmem:[%s2374_s2 + $0x90] sm:$0xff]  }
   0x9   :  { %1322 = vmatpush3.bf16.msra.mxu1 %v1746_v7  ;;  %1301 = vmatprep.subr.bf16.mxu0 %v1752_v8  ;;  %v1848_v24 = vld [vmem:[%s2374_s2 + $0x48] sm:$0xff]   ;;  %v1872_v28 = vld [vmem:[%s2374_s2 + $0x40] sm:$0xff]   ;;  %v21_v33 = vld [vmem:[%s2375_s0 + $0x18] sm:$0xff] }
   0xa   :  { %1323 = vmatprep.subr.bf16.mxu1 %v1758_v9  ;;  %v1854_v25 = vld [vmem:[%s2374_s2 + $0xc8] sm:$0xff]   ;;  %v1878_v29 = vld [vmem:[%s2374_s2 + $0xc0] sm:$0xff]   ;;  %v29_v36 = vpack.c.bf16 %v21_v33, %v21_v33  ;;  %v20_v38 = vld [vmem:[%s2375_s0 + $0x10] sm:$0xff] }
   0xb   :  { %v1860_v26 = vld [vmem:[%s2374_s2 + $0x8] sm:$0xff]   ;;  %v1884_v30 = vld [vmem:[%s2374_s2] sm:$0xff]   ;;  %v28_v39 = vpack.c.bf16 %v20_v38, %v20_v38  ;;  %v1909_v40 = vld [vmem:[%s2374_s2 + $0x178] sm:$0xff]  }
   0xc   :  { %1302 = vmatpush3.bf16.msra.mxu0 %v1764_v10  ;;  %v1866_v27 = vld [vmem:[%s2374_s2 + $0x88] sm:$0xff]   ;;  %v1890_v31 = vld [vmem:[%s2374_s2 + $0x80] sm:$0xff]   ;;  %634 = vmatprep.mubr.bf16.mxu1 %v29_v36  ;;  %v1914_v41 = vld [vmem:[%s2374_s2 + $0x1f8] sm:$0xff]  }
   0xd   :  { %1324 = vmatpush3.bf16.msra.mxu1 %v1770_v11  ;;  %1303 = vmatprep.subr.bf16.mxu0 %v1776_v12  ;;  %v19_v32 = vld [vmem:[%s2375_s0 + $0x8] sm:$0xff]  ;;  %v18_v34 = vld [vmem:[%s2375_s0] sm:$0xff]  ;;  %v1919_v42 = vld [vmem:[%s2374_s2 + $0x138] sm:$0xff]  }
   0xe   :  { %1325 = vmatprep.subr.bf16.mxu1 %v1782_v13  ;;  %v27_v35 = vpack.c.bf16 %v19_v32, %v19_v32  ;;  %v26_v37 = vpack.c.bf16 %v18_v34, %v18_v34  ;;  %v1926_v43 = vld [vmem:[%s2374_s2 + $0x1b8] sm:$0xff]   ;;  %v1932_v44 = vld [vmem:[%s2374_s2 + $0x170] sm:$0xff]   ;;  %v1956_v48 = vld [vmem:[%s2374_s2 + $0x168] sm:$0xff]  }
   0xf   :  { %v1938_v45 = vld [vmem:[%s2374_s2 + $0x1f0] sm:$0xff]   ;;  %v1962_v49 = vld [vmem:[%s2374_s2 + $0x1e8] sm:$0xff]   ;;  %v1980_v52 = vld [vmem:[%s2374_s2 + $0x160] sm:$0xff]  }
  0x10   :  { %1304 = vmatpush3.bf16.msra.mxu0 %v1788_v14  ;;  %594 = vmatprep.mubr.bf16.mxu0 %v27_v35  ;;  %v1944_v46 = vld [vmem:[%s2374_s2 + $0x130] sm:$0xff]   ;;  %v1968_v50 = vld [vmem:[%s2374_s2 + $0x128] sm:$0xff]   ;;  %v1986_v53 = vld [vmem:[%s2374_s2 + $0x1e0] sm:$0xff]  }
  0x11   :  { %1326 = vmatpush3.bf16.msra.mxu1 %v1794_v15  ;;  %1305 = vmatprep.subr.bf16.mxu0 %v1800_v16  ;;  %v1950_v47 = vld [vmem:[%s2374_s2 + $0x1b0] sm:$0xff]   ;;  %v1974_v51 = vld [vmem:[%s2374_s2 + $0x1a8] sm:$0xff]   ;;  %v1992_v54 = vld [vmem:[%s2374_s2 + $0x120] sm:$0xff]  }
  0x12   :  { %1327 = vmatprep.subr.bf16.mxu1 %v1806_v17  ;;  %v1998_v55 = vld [vmem:[%s2374_s2 + $0x1a0] sm:$0xff]   ;;  %v2004_v56 = vld [vmem:[%s2374_s2 + $0x158] sm:$0xff]   ;;  %v2028_v60 = vld [vmem:[%s2374_s2 + $0x150] sm:$0xff]  }
  0x13   :  { %v2010_v57 = vld [vmem:[%s2374_s2 + $0x1d8] sm:$0xff]   ;;  %v2034_v61 = vld [vmem:[%s2374_s2 + $0x1d0] sm:$0xff]   ;;  %v2052_v32 = vld [vmem:[%s2374_s2 + $0x148] sm:$0xff]  }
  0x14   :  { %1306 = vmatpush3.bf16.msra.mxu0 %v1812_v18  ;;  %v2016_v58 = vld [vmem:[%s2374_s2 + $0x118] sm:$0xff]   ;;  %2389 = vst [vmem:[#allocation2_spill] sm:$0xff] %v2034_v61  ;;  %v2040_v62 = vld [vmem:[%s2374_s2 + $0x110] sm:$0xff]   ;;  %2392 = vst [vmem:[#allocation5_spill] sm:$0xff] %v2052_v32 }
  0x15   :  { %1328 = vmatpush3.bf16.msra.mxu1 %v1818_v19  ;;  %1307 = vmatprep.subr.bf16.mxu0 %v1824_v20  ;;  %v2022_v59 = vld [vmem:[%s2374_s2 + $0x198] sm:$0xff]   ;;  %2390 = vst [vmem:[#allocation3_spill] sm:$0xff] %v2040_v62  ;;  %v2046_v63 = vld [vmem:[%s2374_s2 + $0x190] sm:$0xff]   ;;  %v2058_v33 = vld [vmem:[%s2374_s2 + $0x1c8] sm:$0xff]  }
  0x16   :  { %1329 = vmatprep.subr.bf16.mxu1 %v1830_v21  ;;  %2391 = vst [vmem:[#allocation4_spill] sm:$0xff] %v2046_v63  ;;  %2393 = vst [vmem:[#allocation6_spill] sm:$0xff] %v2058_v33  ;;  %v2064_v34 = vld [vmem:[%s2374_s2 + $0x108] sm:$0xff]   ;;  %v2076_v36 = vld [vmem:[%s2374_s2 + $0x140] sm:$0xff]  }
  0x17   :  { %2394 = vst [vmem:[#allocation7_spill] sm:$0xff] %v2064_v34  ;;  %v2070_v35 = vld [vmem:[%s2374_s2 + $0x188] sm:$0xff]   ;;  %2396 = vst [vmem:[#allocation9_spill] sm:$0xff] %v2076_v36  ;;  %v2088_v38 = vld [vmem:[%s2374_s2 + $0x100] sm:$0xff]  }
  0x18   :  { %1308 = vmatpush3.bf16.msra.mxu0 %v1836_v22  ;;  %2395 = vst [vmem:[#allocation8_spill] sm:$0xff] %v2070_v35  ;;  %2398 = vst [vmem:[#allocation11_spill] sm:$0xff] %v2088_v38 }
  0x19   :  { %1330 = vmatpush3.bf16.msra.mxu1 %v1842_v23  ;;  %1309 = vmatprep.subr.bf16.mxu0 %v1848_v24 }
  0x1a   :  { %1331 = vmatprep.subr.bf16.mxu1 %v1854_v25 }
  0x1c   :  { %1310 = vmatpush3.bf16.msra.mxu0 %v1860_v26 }
  0x1d   :  { %1332 = vmatpush3.bf16.msra.mxu1 %v1866_v27  ;;  %1311 = vmatprep.subr.bf16.mxu0 %v1872_v28 }
  0x1e   :  { %1333 = vmatprep.subr.bf16.mxu1 %v1878_v29 }
  0x20   :  { %1312 = vmatpush3.bf16.msra.mxu0 %v1884_v30 }
  0x21   :  { %1334 = vmatpush3.bf16.msra.mxu1 %v1890_v31  ;;  %1341 = vmatprep.subr.bf16.mxu0 %v1909_v40 }
  0x22   :  { %1363 = vmatprep.subr.bf16.mxu1 %v1914_v41 }
  0x23   :  { %595 = vmatmul.mubr.bf16.vlgmr.msra.gmra.mxu0 %v26_v37  ;;  %v2082_v37 = vld [vmem:[%s2374_s2 + $0x1c0] sm:$0xff]  }
  0x24   :  { %635 = vmatmul.mubr.bf16.vlgmr.msra.gmra.mxu1 %v28_v39  ;;  %1342 = vmatpush3.bf16.msra.mxu0 %v1919_v42  ;;  %2397 = vst [vmem:[#allocation10_spill] sm:$0xff] %v2082_v37  ;;  %v2094_v39 = vld [vmem:[%s2374_s2 + $0x180] sm:$0xff]  }
  0x25   :  { %1364 = vmatpush3.bf16.msra.mxu1 %v1926_v43  ;;  %1343 = vmatprep.subr.bf16.mxu0 %v1932_v44 }
  0x26   :  { %1365 = vmatprep.subr.bf16.mxu1 %v1938_v45 }
  0x28   :  { %1344 = vmatpush3.bf16.msra.mxu0 %v1944_v46 }
  0x29   :  { %1366 = vmatpush3.bf16.msra.mxu1 %v1950_v47  ;;  %1345 = vmatprep.subr.bf16.mxu0 %v1956_v48 }
  0x2a   :  { %1367 = vmatprep.subr.bf16.mxu1 %v1962_v49 }
  0x2c   :  { %1346 = vmatpush3.bf16.msra.mxu0 %v1968_v50 }
  0x2d   :  { %1368 = vmatpush3.bf16.msra.mxu1 %v1974_v51  ;;  %1347 = vmatprep.subr.bf16.mxu0 %v1980_v52 }
  0x2e   :  { %1369 = vmatprep.subr.bf16.mxu1 %v1986_v53 }
  0x30   :  { %1348 = vmatpush3.bf16.msra.mxu0 %v1992_v54 }
  0x31   :  { %1370 = vmatpush3.bf16.msra.mxu1 %v1998_v55  ;;  %1349 = vmatprep.subr.bf16.mxu0 %v2004_v56 }
  0x32   :  { %1371 = vmatprep.subr.bf16.mxu1 %v2010_v57 }
  0x34   :  { %1350 = vmatpush3.bf16.msra.mxu0 %v2016_v58 }
  0x35   :  { %1372 = vmatpush3.bf16.msra.mxu1 %v2022_v59  ;;  %1351 = vmatprep.subr.bf16.mxu0 %v2028_v60 }
  0x36   :  { %1373 = vmatprep.subr.bf16.mxu1 %v2034_v61 }
  0x38   :  { %1352 = vmatpush3.bf16.msra.mxu0 %v2040_v62 }
  0x39   :  { %1374 = vmatpush3.bf16.msra.mxu1 %v2046_v63  ;;  %1353 = vmatprep.subr.bf16.mxu0 %v2052_v32  ;;  %v24_v32 = vld [vmem:[%s2375_s0 + $0x30] sm:$0xff]  ;;  %v35_v63 = vld [vmem:[%s2376_s1 + $0x8] sm:$0xff] }
  0x3a   :  { %1375 = vmatprep.subr.bf16.mxu1 %v2058_v33  ;;  %v32_v61 = vpack.c.bf16 %v24_v32, %v24_v32 }
  0x3c   :  { %1354 = vmatpush3.bf16.msra.mxu0 %v2064_v34 }
  0x3d   :  { %1376 = vmatpush3.bf16.msra.mxu1 %v2070_v35  ;;  %1355 = vmatprep.subr.bf16.mxu0 %v2076_v36  ;;  %v23_v35 = vld [vmem:[%s2375_s0 + $0x28] sm:$0xff]  ;;  %v25_v36 = vld [vmem:[%s2375_s0 + $0x38] sm:$0xff] }
  0x3e   :  { %1377 = vmatprep.subr.bf16.mxu1 %v2082_v37  ;;  %v31_v34 = vpack.c.bf16 %v23_v35, %v23_v35  ;;  %v33_v33 = vpack.c.bf16 %v25_v36, %v25_v36  ;;  %v22_v37 = vld [vmem:[%s2375_s0 + $0x20] sm:$0xff]  ;;  %v37_v35 = vld [vmem:[%s2376_s1 + $0x18] sm:$0xff]  ;;  %v43_v36 = vpack.c.bf16 %v35_v63, %v35_v63 }
  0x3f   :  { %v30_v62 = vpack.c.bf16 %v22_v37, %v22_v37 }
  0x40   :  { %1356 = vmatpush3.bf16.msra.mxu0 %v2088_v38  ;;  %674 = vmatprep.mubr.bf16.mxu0 %v31_v34  ;;  %v45_v38 = vpack.c.bf16 %v37_v35, %v37_v35 }
  0x41   :  { %1378 = vmatpush3.bf16.msra.mxu1 %v2094_v39  ;;  %1385 = vmatprep.subr.bf16.mxu0 %v1705_v0  ;;  %v34_v0 = vld [vmem:[%s2376_s1] sm:$0xff] }
  0x42   :  { %714 = vmatprep.mubr.bf16.mxu1 %v33_v33  ;;  %1407 = vmatprep.subr.bf16.mxu1 %v1710_v1  ;;  %v36_v1 = vld [vmem:[%s2376_s1 + $0x10] sm:$0xff] }
  0x43   :  { %675 = vmatmul.mubr.bf16.vlgmr.msra.gmra.mxu0 %v30_v62 }
  0x44   :  { %715 = vmatmul.mubr.bf16.vlgmr.msra.gmra.mxu1 %v32_v61  ;;  %1386 = vmatpush3.bf16.msra.mxu0 %v1716_v2  ;;  %v42_v2 = vpack.c.bf16 %v34_v0, %v34_v0 }
  0x45   :  { %1408 = vmatpush3.bf16.msra.mxu1 %v1722_v3  ;;  %1387 = vmatprep.subr.bf16.mxu0 %v1728_v4  ;;  %v39_v3 = vld [vmem:[%s2376_s1 + $0x28] sm:$0xff]  ;;  %v44_v4 = vpack.c.bf16 %v36_v1, %v36_v1 }
  0x46   :  { %1409 = vmatprep.subr.bf16.mxu1 %v1734_v5  ;;  %754 = vmatprep.mubr.bf16.mxu0 %v43_v36  ;;  %v41_v5 = vld [vmem:[%s2376_s1 + $0x38] sm:$0xff] }
  0x47   :  { %794 = vmatprep.mubr.bf16.mxu1 %v45_v38 }
  0x48   :  { %1388 = vmatpush3.bf16.msra.mxu0 %v1740_v6  ;;  %v47_v6 = vpack.c.bf16 %v39_v3, %v39_v3 }
  0x49   :  { %1410 = vmatpush3.bf16.msra.mxu1 %v1746_v7  ;;  %1389 = vmatprep.subr.bf16.mxu0 %v1752_v8  ;;  %v49_v7 = vpack.c.bf16 %v41_v5, %v41_v5  ;;  %v2399_v8 = vld [vmem:[#allocation2_spill] sm:$0xff] }
  0x4a   :  { %1411 = vmatprep.subr.bf16.mxu1 %v1758_v9  ;;  %v2400_v9 = vld [vmem:[#allocation3_spill] sm:$0xff] }
  0x4c   :  { %1390 = vmatpush3.bf16.msra.mxu0 %v1764_v10  ;;  %v2401_v10 = vld [vmem:[#allocation4_spill] sm:$0xff] }
  0x4d   :  { %1412 = vmatpush3.bf16.msra.mxu1 %v1770_v11  ;;  %1391 = vmatprep.subr.bf16.mxu0 %v1776_v12  ;;  %v2402_v11 = vld [vmem:[#allocation5_spill] sm:$0xff]  ;;  %v2403_v12 = vld [vmem:[#allocation6_spill] sm:$0xff] }
  0x4e   :  { %1413 = vmatprep.subr.bf16.mxu1 %v1782_v13  ;;  %v2404_v13 = vld [vmem:[#allocation7_spill] sm:$0xff] }
  0x50   :  { %1392 = vmatpush3.bf16.msra.mxu0 %v1788_v14  ;;  %v38_v14 = vld [vmem:[%s2376_s1 + $0x20] sm:$0xff] }
  0x51   :  { %1414 = vmatpush3.bf16.msra.mxu1 %v1794_v15  ;;  %1393 = vmatprep.subr.bf16.mxu0 %v1800_v16  ;;  %v2405_v15 = vld [vmem:[#allocation8_spill] sm:$0xff]  ;;  %v2406_v16 = vld [vmem:[#allocation9_spill] sm:$0xff] }
  0x52   :  { %1415 = vmatprep.subr.bf16.mxu1 %v1806_v17  ;;  %v40_v17 = vld [vmem:[%s2376_s1 + $0x30] sm:$0xff] }
  0x54   :  { %1394 = vmatpush3.bf16.msra.mxu0 %v1812_v18  ;;  %v2407_v18 = vld [vmem:[#allocation10_spill] sm:$0xff] }
  0x55   :  { %1416 = vmatpush3.bf16.msra.mxu1 %v1818_v19  ;;  %1395 = vmatprep.subr.bf16.mxu0 %v1824_v20  ;;  %v46_v19 = vpack.c.bf16 %v38_v14, %v38_v14  ;;  %v2408_v20 = vld [vmem:[#allocation11_spill] sm:$0xff]  ;;  %v1059_v14 = vld [vmem:[%s2377_s3 + $0xb0] sm:$0xff] }
  0x56   :  { %1417 = vmatprep.subr.bf16.mxu1 %v1830_v21  ;;  %v48_v21 = vpack.c.bf16 %v40_v17, %v40_v17  ;;  %v1056_v17 = vld [vmem:[%s2377_s3 + $0x98] sm:$0xff] }
  0x58   :  { %1396 = vmatpush3.bf16.msra.mxu0 %v1836_v22  ;;  %v1675_v22 = vmov 0.0  }
  0x59   :  { %1418 = vmatpush3.bf16.msra.mxu1 %v1842_v23  ;;  %1397 = vmatprep.subr.bf16.mxu0 %v1848_v24  ;;  %v886_v23 = vld [vmem:[%s2377_s3 + $0x18] sm:$0xff]  ;;  %v885_v24 = vld [vmem:[%s2377_s3 + $0x10] sm:$0xff] }
  0x5a   :  { %1419 = vmatprep.subr.bf16.mxu1 %v1854_v25  ;;  %v884_v25 = vld [vmem:[%s2377_s3 + $0x8] sm:$0xff] }
  0x5c   :  { %1398 = vmatpush3.bf16.msra.mxu0 %v1860_v26  ;;  %v883_v26 = vld [vmem:[%s2377_s3] sm:$0xff] }
  0x5d   :  { %1420 = vmatpush3.bf16.msra.mxu1 %v1866_v27  ;;  %1399 = vmatprep.subr.bf16.mxu0 %v1872_v28  ;;  %v964_v27 = vld [vmem:[%s2377_s3 + $0x38] sm:$0xff]  ;;  %v963_v28 = vld [vmem:[%s2377_s3 + $0x30] sm:$0xff] }
  0x5e   :  { %1421 = vmatprep.subr.bf16.mxu1 %v1878_v29  ;;  %v962_v29 = vld [vmem:[%s2377_s3 + $0x28] sm:$0xff] }
  0x60   :  { %1400 = vmatpush3.bf16.msra.mxu0 %v1884_v30  ;;  %v961_v30 = vld [vmem:[%s2377_s3 + $0x20] sm:$0xff] }
  0x61   :  { %1422 = vmatpush3.bf16.msra.mxu1 %v1890_v31  ;;  %1429 = vmatprep.subr.bf16.mxu0 %v1909_v40 }
  0x62   :  { %1451 = vmatprep.subr.bf16.mxu1 %v1914_v41 }
  0x63   :  { %755 = vmatmul.mubr.bf16.vlgmr.msra.gmra.mxu0 %v42_v2 }
  0x64   :  { %795 = vmatmul.mubr.bf16.vlgmr.msra.gmra.mxu1 %v44_v4  ;;  %1430 = vmatpush3.bf16.msra.mxu0 %v1919_v42 }
  0x65   :  { %1452 = vmatpush3.bf16.msra.mxu1 %v1926_v43  ;;  %1431 = vmatprep.subr.bf16.mxu0 %v1932_v44 }
  0x66   :  { %1453 = vmatprep.subr.bf16.mxu1 %v1938_v45  ;;  %834 = vmatprep.mubr.bf16.mxu0 %v47_v6 }
  0x67   :  { %874 = vmatprep.mubr.bf16.mxu1 %v49_v7 }
  0x68   :  { %1432 = vmatpush3.bf16.msra.mxu0 %v1944_v46 }
  0x69   :  { %1454 = vmatpush3.bf16.msra.mxu1 %v1950_v47  ;;  %1433 = vmatprep.subr.bf16.mxu0 %v1956_v48 }
  0x6a   :  { %1455 = vmatprep.subr.bf16.mxu1 %v1962_v49 }
  0x6c   :  { %1434 = vmatpush3.bf16.msra.mxu0 %v1968_v50 }
  0x6d   :  { %1456 = vmatpush3.bf16.msra.mxu1 %v1974_v51  ;;  %1435 = vmatprep.subr.bf16.mxu0 %v1980_v52 }
  0x6e   :  { %1457 = vmatprep.subr.bf16.mxu1 %v1986_v53 }
  0x70   :  { %1436 = vmatpush3.bf16.msra.mxu0 %v1992_v54 }
  0x71   :  { %1458 = vmatpush3.bf16.msra.mxu1 %v1998_v55  ;;  %1437 = vmatprep.subr.bf16.mxu0 %v2004_v56 }
  0x72   :  { %1459 = vmatprep.subr.bf16.mxu1 %v2010_v57 }
  0x74   :  { %1438 = vmatpush3.bf16.msra.mxu0 %v2016_v58 }
  0x75   :  { %1460 = vmatpush3.bf16.msra.mxu1 %v2022_v59  ;;  %1439 = vmatprep.subr.bf16.mxu0 %v2028_v60 }
  0x76   :  { %1461 = vmatprep.subr.bf16.mxu1 %v2399_v8 }
  0x78   :  { %1440 = vmatpush3.bf16.msra.mxu0 %v2400_v9 }
  0x79   :  { %1462 = vmatpush3.bf16.msra.mxu1 %v2401_v10  ;;  %1441 = vmatprep.subr.bf16.mxu0 %v2402_v11 }
  0x7a   :  { %1463 = vmatprep.subr.bf16.mxu1 %v2403_v12 }
  0x7c   :  { %1442 = vmatpush3.bf16.msra.mxu0 %v2404_v13  ;;  %v1060_v13 = vld [vmem:[%s2377_s3 + $0xb8] sm:$0xff] }
  0x7d   :  { %1464 = vmatpush3.bf16.msra.mxu1 %v2405_v15  ;;  %1443 = vmatprep.subr.bf16.mxu0 %v2406_v16  ;;  %v1058_v15 = vld [vmem:[%s2377_s3 + $0xa8] sm:$0xff]  ;;  %v1057_v16 = vld [vmem:[%s2377_s3 + $0xa0] sm:$0xff] }
  0x7e   :  { %1465 = vmatprep.subr.bf16.mxu1 %v2407_v18  ;;  %v1055_v18 = vld [vmem:[%s2377_s3 + $0x90] sm:$0xff] }
  0x80   :  { %1444 = vmatpush3.bf16.msra.mxu0 %v2408_v20  ;;  %v1053_v20 = vld [vmem:[%s2377_s3 + $0x80] sm:$0xff] }
  0x81   :  { %1466 = vmatpush3.bf16.msra.mxu1 %v2094_v39  ;;  %1517 = vmatprep.subr.mxu0 %v1675_v22 }
  0x82   :  { %1528 = vmatprep.subr.mxu1 %v1675_v22 }
  0x83   :  { %835 = vmatmul.mubr.bf16.vlgmr.msra.gmra.mxu0 %v46_v19  ;;  %v1054_v19 = vld [vmem:[%s2377_s3 + $0x88] sm:$0xff] }
  0x84   :  { %875 = vmatmul.mubr.bf16.vlgmr.msra.gmra.mxu1 %v48_v21  ;;  %1518 = vmatpush3.msra.mxu0 %v886_v23  ;;  %v1052_v21 = vld [vmem:[%s2377_s3 + $0x78] sm:$0xff]  ;;  %v1051_v23 = vld [vmem:[%s2377_s3 + $0x70] sm:$0xff] }
  0x85   :  { %1519 = vmatprep.subr.mxu0 %v1675_v22  ;;  %1525 = vmatprep.mubr.msk.f32.mxu0 %vm1676_vm0, %v1675_v22 }
  0x86   :  { %1520 = vmatpush3.msra.mxu0 %v885_v24  ;;  %1536 = vmatprep.mubr.msk.f32.mxu1 %vm1676_vm0, %v1675_v22  ;;  %v1050_v24 = vld [vmem:[%s2377_s3 + $0x68] sm:$0xff] }
  0x87   :  { %1521 = vmatprep.subr.mxu0 %v1675_v22  ;;  %1529 = vmatpush3.msra.mxu1 %v964_v27  ;;  %v1047_v27 = vld [vmem:[%s2377_s3 + $0x50] sm:$0xff] }
  0x88   :  { %1522 = vmatpush3.msra.mxu0 %v884_v25  ;;  %1530 = vmatprep.subr.mxu1 %v1675_v22  ;;  %v1049_v25 = vld [vmem:[%s2377_s3 + $0x60] sm:$0xff] }
  0x89   :  { %1523 = vmatprep.subr.mxu0 %v1675_v22  ;;  %1531 = vmatpush3.msra.mxu1 %v963_v28  ;;  %v1046_v28 = vld [vmem:[%s2377_s3 + $0x48] sm:$0xff] }
  0x8a   :  { %1524 = vmatpush3.msra.mxu0 %v883_v26  ;;  %1532 = vmatprep.subr.mxu1 %v1675_v22  ;;  %v1048_v26 = vld [vmem:[%s2377_s3 + $0x58] sm:$0xff] }
  0x8b   :  { %1539 = vmatprep.subr.mxu0 %v1675_v22  ;;  %1533 = vmatpush3.msra.mxu1 %v962_v29  ;;  %v1045_v29 = vld [vmem:[%s2377_s3 + $0x40] sm:$0xff] }
  0x8c   :  { %1534 = vmatprep.subr.mxu1 %v1675_v22 }
  0x8d   :  { %1535 = vmatpush3.msra.mxu1 %v961_v30  ;;  %v1151_v30 = vld [vmem:[%s2377_s3 + $0x138] sm:$0xff] }
  0x8e   :  { %1574 = vmatprep.subr.mxu1 %v1675_v22 }
  0xe3   :  { %v1313_v31 = vpop.f32.mrf.mxu0 }
  0xe4   :  { %v1335_v40 = vpop.f32.mrf.mxu1 }
  0xe5   :  { %v1314_v41 = vpop.f32.mrf.mxu0 }
  0xe6   :  { %v1336_v42 = vpop.f32.mrf.mxu1  ;;  %v1315_v47 = vadd.f32 %v1314_v41, %v1313_v31  ;;  %v1150_v31 = vld [vmem:[%s2377_s3 + $0x130] sm:$0xff]  ;;  %v1148_v41 = vld [vmem:[%s2377_s3 + $0x120] sm:$0xff] }
  0xe7   :  { %v1316_v43 = vpop.f32.mrf.mxu0  ;;  %v1337_v48 = vadd.f32 %v1336_v42, %v1335_v40  ;;  %v1149_v40 = vld [vmem:[%s2377_s3 + $0x128] sm:$0xff]  ;;  %v1147_v42 = vld [vmem:[%s2377_s3 + $0x118] sm:$0xff] }
  0xe8   :  { %v1338_v44 = vpop.f32.mrf.mxu1  ;;  %v1146_v43 = vld [vmem:[%s2377_s3 + $0x110] sm:$0xff] }
  0xe9   :  { %v1317_v45 = vpop.f32.mrf.mxu0  ;;  %v637_v52 = vadd.f32 %v1337_v48, %v1315_v47  ;;  %v1145_v44 = vld [vmem:[%s2377_s3 + $0x108] sm:$0xff]  ;;  %v1142_v47 = vld [vmem:[%s2377_s3 + $0xf0] sm:$0xff] }
  0xea   :  { %v1339_v46 = vpop.f32.mrf.mxu1  ;;  %v1144_v45 = vld [vmem:[%s2377_s3 + $0x100] sm:$0xff]  ;;  %v1141_v48 = vld [vmem:[%s2377_s3 + $0xe8] sm:$0xff] }
  0xeb   :  { %v1143_v46 = vld [vmem:[%s2377_s3 + $0xf8] sm:$0xff] }
 0x103   :  { %v1357_v49 = vpop.f32.mrf.mxu0 }
 0x104   :  { %v1379_v50 = vpop.f32.mrf.mxu1 }
 0x105   :  { %v1358_v51 = vpop.f32.mrf.mxu0 }
 0x106   :  { %v1359_v53 = vadd.f32 %v1358_v51, %v1357_v49  ;;  %v1380_v54 = vpop.f32.mrf.mxu1  ;;  %v1140_v49 = vld [vmem:[%s2377_s3 + $0xe0] sm:$0xff] }
 0x107   :  { %v1381_v55 = vadd.f32 %v1380_v54, %v1379_v50  ;;  %v1360_v56 = vpop.f32.mrf.mxu0  ;;  %v1139_v50 = vld [vmem:[%s2377_s3 + $0xd8] sm:$0xff] }
 0x108   :  { %v677_v57 = vadd.f32 %v1359_v53, %v637_v52  ;;  %v1382_v58 = vpop.f32.mrf.mxu1  ;;  %v1039_v53 = vlaneseq  ;;  %v882_v56 = vld [vmem:[%s2377_s3 + $0x140] sm:$0xff] }
 0x109   :  { %v1361_v59 = vpop.f32.mrf.mxu0 }
 0x10a   :  { %v717_v60 = vadd.f32 %v1381_v55, %v677_v57  ;;  %v1383_v61 = vpop.f32.mrf.mxu1  ;;  %v1040_v54 = vshrl.u32 %v1039_v53, 7 }
 0x10c   :  { %1526 = vmatmul.mubr.msk.f32.vlgmr.msra.gmra.mxu0 %vm887_vm1, %v717_v60  ;;  %v1041_v55 = vsub.s32 0, %v1040_v54 }
 0x10d   :  { %1571 = vmatprep.mubr.msk.f32.mxu0 %vm1676_vm0, %v1675_v22  ;;  %1540 = vmatpush3.msra.mxu0 %v1060_v13 }
 0x10e   :  { %1541 = vmatprep.subr.mxu0 %v1675_v22  ;;  %v1042_v57 = vrot.slane %v882_v56, %v1041_v55 }
 0x10f   :  { %1542 = vmatpush3.msra.mxu0 %v1059_v14 }
 0x110   :  { %1543 = vmatprep.subr.mxu0 %v1675_v22 }
 0x111   :  { %1544 = vmatpush3.msra.mxu0 %v1058_v15 }
 0x112   :  { %1545 = vmatprep.subr.mxu0 %v1675_v22 }
 0x113   :  { %1546 = vmatpush3.msra.mxu0 %v1057_v16 }
 0x114   :  { %1547 = vmatprep.subr.mxu0 %v1675_v22 }
 0x115   :  { %1548 = vmatpush3.msra.mxu0 %v1056_v17 }
 0x116   :  { %1549 = vmatprep.subr.mxu0 %v1675_v22 }
 0x117   :  { %1550 = vmatpush3.msra.mxu0 %v1055_v18 }
 0x118   :  { %1551 = vmatprep.subr.mxu0 %v1675_v22 }
 0x119   :  { %1552 = vmatpush3.msra.mxu0 %v1054_v19 }
 0x11a   :  { %1553 = vmatprep.subr.mxu0 %v1675_v22 }
 0x11b   :  { %1554 = vmatpush3.msra.mxu0 %v1053_v20 }
 0x11c   :  { %1555 = vmatprep.subr.mxu0 %v1675_v22 }
 0x11d   :  { %1556 = vmatpush3.msra.mxu0 %v1052_v21 }
 0x11e   :  { %1557 = vmatprep.subr.mxu0 %v1675_v22 }
 0x11f   :  { %1558 = vmatpush3.msra.mxu0 %v1051_v23 }
 0x120   :  { %1559 = vmatprep.subr.mxu0 %v1675_v22 }
 0x121   :  { %1560 = vmatpush3.msra.mxu0 %v1050_v24 }
 0x122   :  { %1561 = vmatprep.subr.mxu0 %v1675_v22 }
 0x123   :  { %v1401_v62 = vpop.f32.mrf.mxu0  ;;  %1562 = vmatpush3.msra.mxu0 %v1049_v25 }
 0x124   :  { %v1423_v63 = vpop.f32.mrf.mxu1  ;;  %1563 = vmatprep.subr.mxu0 %v1675_v22 }
 0x125   :  { %v1402_v32 = vpop.f32.mrf.mxu0  ;;  %1564 = vmatpush3.msra.mxu0 %v1048_v26 }
 0x126   :  { %v1424_v33 = vpop.f32.mrf.mxu1  ;;  %v1403_v35 = vadd.f32 %v1402_v32, %v1401_v62  ;;  %1565 = vmatprep.subr.mxu0 %v1675_v22  ;;  %v1137_v32 = vld [vmem:[%s2377_s3 + $0xc8] sm:$0xff] }
 0x127   :  { %v1404_v34 = vpop.f32.mrf.mxu0  ;;  %v1425_v36 = vadd.f32 %v1424_v33, %v1423_v63  ;;  %1566 = vmatpush3.msra.mxu0 %v1047_v27  ;;  %v1138_v63 = vld [vmem:[%s2377_s3 + $0xd0] sm:$0xff]  ;;  %v1136_v33 = vld [vmem:[%s2377_s3 + $0xc0] sm:$0xff] }
 0x128   :  { %v1426_v37 = vpop.f32.mrf.mxu1  ;;  %1567 = vmatprep.subr.mxu0 %v1675_v22  ;;  %v1063_v34 = vsub.s32 1, %v1040_v54 }
 0x129   :  { %v1405_v38 = vpop.f32.mrf.mxu0  ;;  %v797_v3 = vadd.f32 %v1425_v36, %v1403_v35  ;;  %1568 = vmatpush3.msra.mxu0 %v1046_v28 }
 0x12a   :  { %v1427_v39 = vpop.f32.mrf.mxu1  ;;  %1569 = vmatprep.subr.mxu0 %v1675_v22  ;;  %v1064_v37 = vrot.slane %v882_v56, %v1063_v34 }
 0x12b   :  { %1570 = vmatpush3.msra.mxu0 %v1045_v29 }
 0x143   :  { %v1445_v0 = vpop.f32.mrf.mxu0 }
 0x144   :  { %v1467_v1 = vpop.f32.mrf.mxu1 }
 0x145   :  { %v1446_v2 = vpop.f32.mrf.mxu0 }
 0x146   :  { %v1447_v4 = vadd.f32 %v1446_v2, %v1445_v0  ;;  %v1468_v5 = vpop.f32.mrf.mxu1  ;;  %v1154_v0 = vsub.s32 2, %v1040_v54 }
 0x147   :  { %v1448_v6 = vpop.f32.mrf.mxu0  ;;  %v1469_v8 = vadd.f32 %v1468_v5, %v1467_v1 }
 0x148   :  { %v837_v7 = vadd.f32 %v1447_v4, %v797_v3  ;;  %v1470_v9 = vpop.f32.mrf.mxu1  ;;  %v1155_v1 = vrot.slane %v882_v56, %v1154_v0 }
 0x149   :  { %v1449_v10 = vpop.f32.mrf.mxu0 }
 0x14a   :  { %v877_v11 = vadd.f32 %v1469_v8, %v837_v7  ;;  %v1471_v12 = vpop.f32.mrf.mxu1 }
 0x14c   :  { %1537 = vmatmul.mubr.msk.f32.vlgmr.msra.gmra.mxu1 %vm887_vm1, %v877_v11 }
 0x14d   :  { %1606 = vmatprep.mubr.msk.f32.mxu1 %vm1676_vm0, %v1675_v22  ;;  %1575 = vmatpush3.msra.mxu1 %v1151_v30 }
 0x14e   :  { %1576 = vmatprep.subr.mxu1 %v1675_v22 }
 0x14f   :  { %1577 = vmatpush3.msra.mxu1 %v1150_v31 }
 0x150   :  { %1578 = vmatprep.subr.mxu1 %v1675_v22 }
 0x151   :  { %1579 = vmatpush3.msra.mxu1 %v1149_v40 }
 0x152   :  { %1580 = vmatprep.subr.mxu1 %v1675_v22 }
 0x153   :  { %1581 = vmatpush3.msra.mxu1 %v1148_v41 }
 0x154   :  { %1582 = vmatprep.subr.mxu1 %v1675_v22 }
 0x155   :  { %1583 = vmatpush3.msra.mxu1 %v1147_v42 }
 0x156   :  { %1584 = vmatprep.subr.mxu1 %v1675_v22 }
 0x157   :  { %1585 = vmatpush3.msra.mxu1 %v1146_v43 }
 0x158   :  { %1586 = vmatprep.subr.mxu1 %v1675_v22 }
 0x159   :  { %1587 = vmatpush3.msra.mxu1 %v1145_v44 }
 0x15a   :  { %1588 = vmatprep.subr.mxu1 %v1675_v22 }
 0x15b   :  { %1589 = vmatpush3.msra.mxu1 %v1144_v45 }
 0x15c   :  { %1590 = vmatprep.subr.mxu1 %v1675_v22 }
 0x15d   :  { %1591 = vmatpush3.msra.mxu1 %v1143_v46 }
 0x15e   :  { %1592 = vmatprep.subr.mxu1 %v1675_v22 }
 0x15f   :  { %1593 = vmatpush3.msra.mxu1 %v1142_v47 }
 0x160   :  { %1594 = vmatprep.subr.mxu1 %v1675_v22 }
 0x161   :  { %1595 = vmatpush3.msra.mxu1 %v1141_v48 }
 0x162   :  { %1596 = vmatprep.subr.mxu1 %v1675_v22 }
 0x163   :  { %1597 = vmatpush3.msra.mxu1 %v1140_v49 }
 0x164   :  { %1598 = vmatprep.subr.mxu1 %v1675_v22 }
 0x165   :  { %1599 = vmatpush3.msra.mxu1 %v1139_v50 }
 0x166   :  { %1600 = vmatprep.subr.mxu1 %v1675_v22 }
 0x167   :  { %1601 = vmatpush3.msra.mxu1 %v1138_v63 }
 0x168   :  { %1602 = vmatprep.subr.mxu1 %v1675_v22 }
 0x169   :  { %1603 = vmatpush3.msra.mxu1 %v1137_v32 }
 0x16a   :  { %1604 = vmatprep.subr.mxu1 %v1675_v22 }
 0x16b   :  { %1605 = vmatpush3.msra.mxu1 %v1136_v33 }
 0x1cc   :  { %v957_v51 = vpop.f32.mrf.mxu0 }
 0x1ce   :  { %v1527_v52 = vpop.f32.mrf.mxu0 }
 0x20c   :  { %v1034_v58 = vpop.f32.mrf.mxu1 }
 0x20d   :  { %v1038_v59 = vsub.f32 %v957_v51, %v1034_v58 }
 0x20e   :  { %v1538_v60 = vpop.f32.mrf.mxu1 }
 0x20f   :  { %v1043_v61 = vadd.f32 %v1042_v57, %v1038_v59 }
 0x211   :  { %v1044_v62 = vmax.f32 %v1043_v61, 0.0 }
 0x213   :  { %1572 = vmatmul.mubr.f32.vlgmr.msra.gmra.mxu0 %v1044_v62 }
 0x2d3   :  { %v1131_v38 = vpop.f32.mrf.mxu0 }
 0x2d4   :  { %v1132_v39 = vadd.f32 %v1131_v38, %v1064_v37 }
 0x2d5   :  { %v1573_v35 = vpop.f32.mrf.mxu0 }
 0x2d6   :  { %v1135_v36 = vmax.f32 %v1132_v39, 0.0 }
 0x2d8   :  { %1607 = vmatmul.mubr.f32.vlgmr.msra.gmra.mxu1 %v1135_v36 }
 0x398   :  { %v1222_v2 = vpop.f32.mrf.mxu1 }
 0x399   :  { %v1223_v3 = vadd.f32 %v1222_v2, %v1155_v1 }
 0x39a   :  { %v1608_v4 = vpop.f32.mrf.mxu1 }
 0x39b   :  { %1226 = vst [vmem:[%s2378_s4] sm:$0xff] %v1223_v3 }

</bundles_post_ra>
